<compile_context>
chip_gen: v7x
topology: tpu7x:2x2x1
jax: 0.10.0
libtpu: 0.0.40
codegen_flags: <defaults>
</compile_context>

<pallas_src>
import functools
import math

import jax
import jax.numpy as jnp
from jax.experimental import pallas as pl
from jax.experimental.pallas import tpu as pltpu

_F32 = jnp.float32
_BF16 = jnp.bfloat16


def _derive_vmem_limit():
    # ~75% of physical VMEM: ~96 MiB on v5e/v6e (128 MiB), ~48 MiB on v7x (64 MiB).
    try:
        info = pltpu.get_tpu_info()
        cap = int(getattr(info, "vmem_capacity_bytes", 0) or 0)
        if cap > 0:
            return (cap * 3) // 4
    except Exception:
        pass
    return 48 * 1024 * 1024      # safe lower bound on every generation


_VMEM_LIMIT = _derive_vmem_limit()

# Tri-state: None = unknown; set True/False after the first block-kernel call
# tells us whether this build accepts single-buffered (resident) weight blocks.
_SINGLE_BUFFER_STATE = None


def _const_index_map(ndim):
    return lambda i, j: (0,) * ndim


# ----------------------------- in-kernel helpers -----------------------------

def _layer_norm(x, gamma, beta, eps=1e-5):
    # PyTorch nn.LayerNorm: biased variance over the last dim, eps=1e-5. f32 stats.
    mu = jnp.mean(x, axis=-1, keepdims=True)
    var = jnp.mean(jnp.square(x - mu), axis=-1, keepdims=True)
    return (x - mu) * jax.lax.rsqrt(var + eps) * gamma + beta


def _gelu(x):
    # Exact erf-based GELU (PyTorch F.gelu default).
    return jax.nn.gelu(x, approximate=False)


def _row_tile(n, target=512):
    # Row (second-minor) tile: full if small, else a multiple-of-8 target tile
    # (Pallas masks the ragged remainder block).
    return n if n <= target else target


def _pick_tq(s):
    # Query tile must divide S so the in-kernel pl.ds row slice stays inside the
    # (S, H) activation block.  256 fits v5e/v6e comfortably; still within the
    # ~48 MiB v7x budget for BERT-base-sized layers with resident bf16 weights.
    if s <= 256:
        return s
    for cand in (256, 128, 64):
        if s % cand == 0:
            return cand
    return s


# ----------------------------- embedding kernel ------------------------------

def embed_ln_kernel(tok_ref, typ_ref, pos_ref, g_ref, b_ref, out_ref):
    x = tok_ref[...] + typ_ref[...] + pos_ref[...]          # (S,H)+(1,H)+(S,H)
    out_ref[...] = _layer_norm(x, g_ref[...], b_ref[...]).astype(out_ref.dtype)


def run_embedding(tok, typ_row, pos, gamma, beta):
    # tok: (B,S,H) f32 gathered token embeddings; typ_row: (1,H) (token_type_ids
    # are all zero in the reference forward); pos: (S,H).  Output bf16.
    b, s, h = tok.shape
    return pl.pallas_call(
        embed_ln_kernel,
        out_shape=jax.ShapeDtypeStruct((b, s, h), _BF16),
        grid_spec=pltpu.PrefetchScalarGridSpec(
            num_scalar_prefetch=0,
            grid=(b,),
            in_specs=[
                pl.BlockSpec((None, s, h), lambda i: (i, 0, 0)),
                pl.BlockSpec((1, h), lambda i: (0, 0)),
                pl.BlockSpec((s, h), lambda i: (0, 0)),
                pl.BlockSpec((1, h), lambda i: (0, 0)),
                pl.BlockSpec((1, h), lambda i: (0, 0)),
            ],
            out_specs=pl.BlockSpec((None, s, h), lambda i: (i, 0, 0)),
        ),
        compiler_params=pltpu.CompilerParams(
            dimension_semantics=("parallel",),
            vmem_limit_bytes=_VMEM_LIMIT,
        ),
    )(tok, typ_row, pos, gamma, beta)


# ----------------------------- BERT block kernel ------------------------------

_BLOCK_PARAM_ORDER = ("wqkv", "bqkv", "wo", "bo", "ln1g", "ln1b",
                      "w1", "b1", "w2", "b2", "ln2g", "ln2b")


def bert_block_kernel(x_ref, wqkv_ref, bqkv_ref, wo_ref, bo_ref, ln1g_ref,
                      ln1b_ref, w1_ref, b1_ref, w2_ref, b2_ref, ln2g_ref,
                      ln2b_ref, out_ref, qkv_scr, *, num_heads, tq):
    seq, hidden = x_ref.shape            # squeezed (S, H) bf16 block
    hs = hidden // num_heads
    j = pl.program_id(1)

    # Fused Q|K|V projection, computed once per batch row (j == 0).  The scratch
    # persists across the "arbitrary" query-tile axis, so K/V (and Q) are NOT
    # recomputed per query tile.  1/sqrt(head_size) is already folded into the
    # Q columns of wqkv / bqkv.
    @pl.when(j == 0)
    def _():
        qkv = jnp.dot(x_ref[...], wqkv_ref[...],
                      preferred_element_type=_F32) + bqkv_ref[...]
        qkv_scr[...] = qkv.astype(_BF16)

    row0 = pl.multiple_of(j * tq, tq)
    x_q = x_ref[pl.ds(row0, tq), :].astype(_F32)             # (Tq, H) residual, f32

    qkv_q = qkv_scr[pl.ds(row0, tq), :]                       # (Tq, 3H) bf16
    q_all = qkv_q[:, :hidden]                                 # pre-scaled Q rows
    kv = qkv_scr[...]                                         # (S, 3H) bf16
    k_all = kv[:, hidden:2 * hidden]
    v_all = kv[:, 2 * hidden:]

    # Per-head attention; contexts are concatenated so the output projection is
    # one (Tq,H)x(H,H) MXU pass (contraction K=H, not head_size).
    ctxs = []
    for hd in range(num_heads):
        lo, hi = hd * hs, (hd + 1) * hs
        # scores[q,k] = Q[q].K[k]/sqrt(hs); reference softmaxes over the key axis.
        sc = jax.lax.dot_general(q_all[:, lo:hi], k_all[:, lo:hi],
                                 (((1,), (1,)), ((), ())),
                                 preferred_element_type=_F32)     # (Tq, S)
        sc = sc - jnp.max(sc, axis=-1, keepdims=True)
        e = jnp.exp(sc)
        a = e / jnp.sum(e, axis=-1, keepdims=True)                # exact softmax
        ctxs.append(jnp.dot(a.astype(_BF16), v_all[:, lo:hi],
                            preferred_element_type=_F32))         # (Tq, hs)
    ctx = jnp.concatenate(ctxs, axis=-1).astype(_BF16)            # (Tq, H)
    attn = jnp.dot(ctx, wo_ref[...], preferred_element_type=_F32) + bo_ref[...]

    h1 = _layer_norm(x_q + attn, ln1g_ref[...], ln1b_ref[...])

    m = _gelu(jnp.dot(h1.astype(_BF16), w1_ref[...],
                      preferred_element_type=_F32) + b1_ref[...])
    y = jnp.dot(m.astype(_BF16), w2_ref[...],
                preferred_element_type=_F32) + b2_ref[...]

    out_ref[...] = _layer_norm(y + h1, ln2g_ref[...],
                               ln2b_ref[...]).astype(out_ref.dtype)


def run_block(x, params, num_heads):
    global _SINGLE_BUFFER_STATE
    b, s, h = x.shape
    tq = _pick_tq(s)
    weights = [params[k] for k in _BLOCK_PARAM_ORDER]

    def build(single_buffer):
        in_specs = [pl.BlockSpec((None, s, h), lambda i, j: (i, 0, 0))]
        for w in weights:
            if single_buffer:
                # Grid-invariant weights: one resident VMEM copy instead of the
                # default double buffer (halves weight VMEM footprint).
                spec = pl.BlockSpec(w.shape, _const_index_map(w.ndim),
                                    pipeline_mode=pl.Buffered(1))
            else:
                spec = pl.BlockSpec(w.shape, _const_index_map(w.ndim))
            in_specs.append(spec)
        return pl.pallas_call(
            functools.partial(bert_block_kernel, num_heads=num_heads, tq=tq),
            out_shape=jax.ShapeDtypeStruct((b, s, h), _BF16),
            grid_spec=pltpu.PrefetchScalarGridSpec(
                num_scalar_prefetch=0,
                grid=(b, s // tq),
                in_specs=in_specs,
                out_specs=pl.BlockSpec((None, tq, h), lambda i, j: (i, j, 0)),
                scratch_shapes=[pltpu.VMEM((s, 3 * h), _BF16)],   # cached Q|K|V
            ),
            compiler_params=pltpu.CompilerParams(
                # Batch axis "parallel" (megacore-shardable on v7x); query-tile
                # axis "arbitrary" so the cached QKV scratch stays valid.
                dimension_semantics=("parallel", "arbitrary"),
                vmem_limit_bytes=_VMEM_LIMIT,
            ),
        )(x, *weights)

    if _SINGLE_BUFFER_STATE is None:
        try:
            out = build(True)
            jax.block_until_ready(out)
            _SINGLE_BUFFER_STATE = True
            return out
        except Exception:   # this build rejects pipeline_mode=pl.Buffered(1)
            _SINGLE_BUFFER_STATE = False
    return build(_SINGLE_BUFFER_STATE)


# ------------------------------ output-head kernels ----------------------------

def head_transform_kernel(x_ref, wl_ref, bl_ref, g_ref, b_ref, out_ref):
    act = _gelu(jnp.dot(x_ref[...], wl_ref[...],
                        preferred_element_type=_F32) + bl_ref[...])
    out_ref[...] = _layer_norm(act, g_ref[...], b_ref[...]).astype(out_ref.dtype)


def run_head_transform(x, wl, bl, gamma, beta):
    n, h = x.shape
    rt = _row_tile(n)
    return pl.pallas_call(
        head_transform_kernel,
        out_shape=jax.ShapeDtypeStruct((n, h), _BF16),
        grid_spec=pltpu.PrefetchScalarGridSpec(
            num_scalar_prefetch=0,
            grid=(pl.cdiv(n, rt),),
            in_specs=[pl.BlockSpec((rt, h), lambda i: (i, 0)),
                      pl.BlockSpec(wl.shape, lambda i: (0, 0)),
                      pl.BlockSpec(bl.shape, lambda i: (0, 0)),
                      pl.BlockSpec(gamma.shape, lambda i: (0, 0)),
                      pl.BlockSpec(beta.shape, lambda i: (0, 0))],
            out_specs=pl.BlockSpec((rt, h), lambda i: (i, 0)),
        ),
        compiler_params=pltpu.CompilerParams(
            dimension_semantics=("parallel",),
            vmem_limit_bytes=_VMEM_LIMIT,
        ),
    )(x, wl, bl, gamma, beta)


def unembed_kernel(h_ref, wu_ref, bu_ref, out_ref):
    out_ref[...] = jnp.dot(h_ref[...], wu_ref[...],
                           preferred_element_type=_F32) + bu_ref[...]


def run_unembed(h, wu, bu):
    n, hid = h.shape
    vocab = wu.shape[1]
    rt = _row_tile(n, target=512)
    vt = vocab if vocab <= 2048 else 2048     # lane-dense, 128-aligned vocab tiles
    return pl.pallas_call(
        unembed_kernel,
        out_shape=jax.ShapeDtypeStruct((n, vocab), _F32),
        grid_spec=pltpu.PrefetchScalarGridSpec(
            num_scalar_prefetch=0,
            grid=(pl.cdiv(n, rt), pl.cdiv(vocab, vt)),
            in_specs=[pl.BlockSpec((rt, hid), lambda i, j: (i, 0)),
                      pl.BlockSpec((hid, vt), lambda i, j: (0, j)),
                      pl.BlockSpec((1, vt), lambda i, j: (0, j))],
            out_specs=pl.BlockSpec((rt, vt), lambda i, j: (i, j)),
        ),
        compiler_params=pltpu.CompilerParams(
            dimension_semantics=("parallel", "parallel"),
            vmem_limit_bytes=_VMEM_LIMIT,
        ),
    )(h, wu, bu)


def classifier_kernel(x_ref, w_ref, b_ref, out_ref):
    out_ref[...] = jnp.dot(x_ref[...], w_ref[...],
                           preferred_element_type=_F32) + b_ref[...]


def run_classifier(cls_tokens, wc, bc):
    # Tiny (B, num_classes) matmul: single ungridded call, whole arrays in VMEM.
    bsz = cls_tokens.shape[0]
    n_cls = wc.shape[1]
    return pl.pallas_call(
        classifier_kernel,
        out_shape=jax.ShapeDtypeStruct((bsz, n_cls), _F32),
    )(cls_tokens, wc, bc)


# ------------------------------ parameter init --------------------------------

def _init_linear_f32(key, in_dim, out_dim):
    k1, k2 = jax.random.split(key)
    bound = 1.0 / math.sqrt(in_dim)
    # Weight pre-transposed to (in, out); PyTorch nn.Linear uniform init.
    w = jax.random.uniform(k1, (in_dim, out_dim), _F32, -bound, bound)
    b = jax.random.uniform(k2, (1, out_dim), _F32, -bound, bound)
    return w, b


def init_params(key, vocab_size, hidden_size, max_pos, type_vocab_size,
                intermediate_size, num_layers, num_heads, num_classes):
    keys = jax.random.split(key, 4 + num_layers)
    params = {
        "token_emb": jax.random.normal(keys[0], (vocab_size, hidden_size), _F32),
        "pos_emb": jax.random.normal(keys[1], (max_pos, hidden_size), _F32),
        "type_emb": jax.random.normal(keys[2], (type_vocab_size, hidden_size), _F32),
        "emb_lng": jnp.ones((1, hidden_size), _F32),
        "emb_lnb": jnp.zeros((1, hidden_size), _F32),
    }
    scale = 1.0 / math.sqrt(hidden_size // num_heads)
    blocks = []
    for layer in range(num_layers):
        lk = jax.random.split(keys[3 + layer], 6)
        wq, bq = _init_linear_f32(lk[0], hidden_size, hidden_size)
        wk, bk = _init_linear_f32(lk[1], hidden_size, hidden_size)
        wv, bv = _init_linear_f32(lk[2], hidden_size, hidden_size)
        wo, bo = _init_linear_f32(lk[3], hidden_size, hidden_size)
        w1, b1 = _init_linear_f32(lk[4], hidden_size, intermediate_size)
        w2, b2 = _init_linear_f32(lk[5], intermediate_size, hidden_size)
        # Fused Q|K|V weight/bias with 1/sqrt(head_size) folded into the Q
        # columns (mathematically identical to scaling the attention scores).
        wqkv = jnp.concatenate([wq * scale, wk, wv], axis=1).astype(_BF16)
        bqkv = jnp.concatenate([bq * scale, bk, bv], axis=1)   # f32 (1, 3H)
        blocks.append(dict(
            wqkv=wqkv, bqkv=bqkv, wo=wo.astype(_BF16), bo=bo,
            ln1g=jnp.ones((1, hidden_size), _F32),
            ln1b=jnp.zeros((1, hidden_size), _F32),
            w1=w1.astype(_BF16), b1=b1, w2=w2.astype(_BF16), b2=b2,
            ln2g=jnp.ones((1, hidden_size), _F32),
            ln2b=jnp.zeros((1, hidden_size), _F32),
        ))
    params["blocks"] = blocks

    k_head = jax.random.split(keys[3 + num_layers], 3)
    wl, bl = _init_linear_f32(k_head[0], hidden_size, hidden_size)
    wu, bu = _init_linear_f32(k_head[1], hidden_size, vocab_size)
    wc, bc = _init_linear_f32(k_head[2], hidden_size, num_classes)
    params["head"] = dict(
        wl=wl.astype(_BF16), bl=bl,
        lng=jnp.ones((1, hidden_size), _F32),
        lnb=jnp.zeros((1, hidden_size), _F32),
        wu=wu.astype(_BF16), bu=bu, wc=wc.astype(_BF16), bc=bc,
    )
    return params


# ------------------------------ full forward pass ------------------------------

def bert_with_classify_forward(params, input_ids, num_heads):
    bsz, seq = input_ids.shape
    hidden = params["token_emb"].shape[1]

    # TODO(synk): embedding-table gathers stay in plain JAX (dynamic gather has
    # no clean BlockSpec form); everything downstream runs in Pallas kernels.
    tok = params["token_emb"][input_ids]               # (B, S, H) f32
    typ_row = params["type_emb"][0:1]                  # (1, H): token_type_ids == 0
    pos = params["pos_emb"][:seq]                      # (S, H)

    x = run_embedding(tok, typ_row, pos, params["emb_lng"], params["emb_lnb"])

    for blk in params["blocks"]:
        x = run_block(x, blk, num_heads)               # bf16 activations between layers

    head = params["head"]
    flat = x.reshape(bsz * seq, hidden)
    h_t = run_head_transform(flat, head["wl"], head["bl"], head["lng"], head["lnb"])
    logits = run_unembed(h_t, head["wu"], head["bu"]).reshape(bsz, seq, -1)
    classifs = run_classifier(x[:, 0, :], head["wc"], head["bc"])
    return logits, classifs


# ------------------------------------ main -------------------------------------

if __name__ == "__main__":
    # Small config consistent with BertWithClassify.__init__.
    vocab_size = 64
    hidden_size = 32
    max_position_embeddings = 16
    type_vocab_size = 2
    dropout = 0.1          # identity at inference
    intermediate_size = 64
    num_heads = 4
    num_layers = 2
    num_classes = 3
    batch, seq = 2, 8

    key = jax.random.PRNGKey(0)
    k_params, k_ids = jax.random.split(key)
    params = init_params(k_params, vocab_size, hidden_size,
                         max_position_embeddings, type_vocab_size,
                         intermediate_size, num_layers, num_heads, num_classes)
    input_ids = jax.random.randint(k_ids, (batch, seq), 0, vocab_size,
                                   dtype=jnp.int32)

    logits, classifs = bert_with_classify_forward(params, input_ids, num_heads)
    jax.block_until_ready((logits, classifs))

    assert logits.shape == (batch, seq, vocab_size)
    assert classifs.shape == (batch, num_classes)
    assert bool(jnp.all(jnp.isfinite(logits))) and bool(jnp.all(jnp.isfinite(classifs)))
    print("KERNEL_OK")
</pallas_src>

<mosaic_0001>
module attributes {stable_mosaic.version = 11 : i64} {
  func.func @embed_ln_kernel(%arg0: i32, %arg1: memref<1x8x32xf32, #tpu.memory_space<vmem>>, %arg2: memref<1x32xf32, #tpu.memory_space<vmem>>, %arg3: memref<8x32xf32, #tpu.memory_space<vmem>>, %arg4: memref<1x32xf32, #tpu.memory_space<vmem>>, %arg5: memref<1x32xf32, #tpu.memory_space<vmem>>, %arg6: memref<1x8x32xbf16, #tpu.memory_space<vmem>>) attributes {dimension_semantics = [#tpu.dimension_semantics<parallel>], iteration_bounds = array<i64: 2>, scalar_prefetch = 0 : i64, scratch_operands = 0 : i64, tpu.core_type = #tpu.core_type<tc>, window_params = [{transform_indices = @transform_0, window_bounds = array<i64: 1, 8, 32>}, {pipeline_mode = #tpu.pipeline_mode<synchronous>, transform_indices = @transform_1, window_bounds = array<i64: 1, 32>}, {pipeline_mode = #tpu.pipeline_mode<synchronous>, transform_indices = @transform_2, window_bounds = array<i64: 8, 32>}, {pipeline_mode = #tpu.pipeline_mode<synchronous>, transform_indices = @transform_3, window_bounds = array<i64: 1, 32>}, {pipeline_mode = #tpu.pipeline_mode<synchronous>, transform_indices = @transform_4, window_bounds = array<i64: 1, 32>}, {transform_indices = @transform_5, window_bounds = array<i64: 1, 8, 32>}]} {
    %c0 = arith.constant 0 : index
    %c0_0 = arith.constant 0 : index
    %c0_1 = arith.constant 0 : index
    %0 = vector.load %arg1[%c0, %c0_0, %c0_1] : memref<1x8x32xf32, #tpu.memory_space<vmem>>, vector<1x8x32xf32>
    %1 = vector.shape_cast %0 : vector<1x8x32xf32> to vector<8x32xf32>
    %c0_2 = arith.constant 0 : index
    %c0_3 = arith.constant 0 : index
    %2 = vector.load %arg2[%c0_2, %c0_3] : memref<1x32xf32, #tpu.memory_space<vmem>>, vector<1x32xf32>
    %3 = vector.broadcast %2 : vector<1x32xf32> to vector<8x32xf32>
    %4 = arith.addf %1, %3 : vector<8x32xf32>
    %c0_4 = arith.constant 0 : index
    %c0_5 = arith.constant 0 : index
    %5 = vector.load %arg3[%c0_4, %c0_5] : memref<8x32xf32, #tpu.memory_space<vmem>>, vector<8x32xf32>
    %6 = arith.addf %4, %5 : vector<8x32xf32>
    %c0_6 = arith.constant 0 : index
    %c0_7 = arith.constant 0 : index
    %7 = vector.load %arg4[%c0_6, %c0_7] : memref<1x32xf32, #tpu.memory_space<vmem>>, vector<1x32xf32>
    %c0_8 = arith.constant 0 : index
    %c0_9 = arith.constant 0 : index
    %8 = vector.load %arg5[%c0_8, %c0_9] : memref<1x32xf32, #tpu.memory_space<vmem>>, vector<1x32xf32>
    %cst = arith.constant dense<0.000000e+00> : vector<8xf32>
    %9 = vector.multi_reduction <add>, %6, %cst [1] : vector<8x32xf32> to vector<8xf32>
    %10 = vector.shape_cast %9 : vector<8xf32> to vector<8x1xf32>
    %cst_10 = arith.constant 3.200000e+01 : f32
    %11 = vector.broadcast %cst_10 : f32 to vector<8x1xf32>
    %12 = arith.divf %10, %11 : vector<8x1xf32>
    %13 = vector.broadcast %12 : vector<8x1xf32> to vector<8x32xf32>
    %14 = arith.subf %6, %13 : vector<8x32xf32>
    %15 = arith.mulf %14, %14 : vector<8x32xf32>
    %cst_11 = arith.constant dense<0.000000e+00> : vector<8xf32>
    %16 = vector.multi_reduction <add>, %15, %cst_11 [1] : vector<8x32xf32> to vector<8xf32>
    %17 = vector.shape_cast %16 : vector<8xf32> to vector<8x1xf32>
    %cst_12 = arith.constant 3.200000e+01 : f32
    %18 = vector.broadcast %cst_12 : f32 to vector<8x1xf32>
    %19 = arith.divf %17, %18 : vector<8x1xf32>
    %20 = vector.broadcast %12 : vector<8x1xf32> to vector<8x32xf32>
    %21 = arith.subf %6, %20 : vector<8x32xf32>
    %cst_13 = arith.constant 9.99999974E-6 : f32
    %22 = vector.broadcast %cst_13 : f32 to vector<8x1xf32>
    %23 = arith.addf %19, %22 : vector<8x1xf32>
    %24 = math.rsqrt %23 : vector<8x1xf32>
    %25 = vector.broadcast %24 : vector<8x1xf32> to vector<8x32xf32>
    %26 = arith.mulf %21, %25 : vector<8x32xf32>
    %27 = vector.broadcast %7 : vector<1x32xf32> to vector<8x32xf32>
    %28 = arith.mulf %26, %27 : vector<8x32xf32>
    %29 = vector.broadcast %8 : vector<1x32xf32> to vector<8x32xf32>
    %30 = arith.addf %28, %29 : vector<8x32xf32>
    %31 = arith.truncf %30 : vector<8x32xf32> to vector<8x32xbf16>
    %c0_14 = arith.constant 0 : index
    %c0_15 = arith.constant 0 : index
    %c0_16 = arith.constant 0 : index
    %32 = vector.load %arg6[%c0_14, %c0_15, %c0_16] : memref<1x8x32xbf16, #tpu.memory_space<vmem>>, vector<1x8x32xbf16>
    %33 = vector.shape_cast %32 : vector<1x8x32xbf16> to vector<8x32xbf16>
    %34 = vector.shape_cast %31 : vector<8x32xbf16> to vector<1x8x32xbf16>
    tpu.vector_store %arg6[%c0_14, %c0_15, %c0_16], %34 {strides = array<i32>} : memref<1x8x32xbf16, #tpu.memory_space<vmem>>, vector<1x8x32xbf16>,
    return
  }
  func.func @transform_0(%arg0: i32) -> (i32, i32, i32) {
    %c0_i32 = arith.constant 0 : i32
    %c0_i32_0 = arith.constant 0 : i32
    %c0_i32_1 = arith.constant 0 : i32
    return %arg0, %c0_i32, %c0_i32_0 : i32, i32, i32
  }
  func.func @transform_1(%arg0: i32) -> (i32, i32) {
    %c0_i32 = arith.constant 0 : i32
    %c0_i32_0 = arith.constant 0 : i32
    %c0_i32_1 = arith.constant 0 : i32
    return %c0_i32, %c0_i32_0 : i32, i32
  }
  func.func @transform_2(%arg0: i32) -> (i32, i32) {
    %c0_i32 = arith.constant 0 : i32
    %c0_i32_0 = arith.constant 0 : i32
    %c0_i32_1 = arith.constant 0 : i32
    return %c0_i32, %c0_i32_0 : i32, i32
  }
  func.func @transform_3(%arg0: i32) -> (i32, i32) {
    %c0_i32 = arith.constant 0 : i32
    %c0_i32_0 = arith.constant 0 : i32
    %c0_i32_1 = arith.constant 0 : i32
    return %c0_i32, %c0_i32_0 : i32, i32
  }
  func.func @transform_4(%arg0: i32) -> (i32, i32) {
    %c0_i32 = arith.constant 0 : i32
    %c0_i32_0 = arith.constant 0 : i32
    %c0_i32_1 = arith.constant 0 : i32
    return %c0_i32, %c0_i32_0 : i32, i32
  }
  func.func @transform_5(%arg0: i32) -> (i32, i32, i32) {
    %c0_i32 = arith.constant 0 : i32
    %c0_i32_0 = arith.constant 0 : i32
    %c0_i32_1 = arith.constant 0 : i32
    return %arg0, %c0_i32, %c0_i32_0 : i32, i32, i32
  }
}

</mosaic_0001>

<bundles_post_ra>
// kernel: tpu_custom_call.1
= control target key start
LH: loop header
LB: loop body
LE: loop exit
PB: predicated region body
PF: predicated region fallthrough
CT: control target
= control target key end

     0   :  { %10 = vsyncpa [#allocation3], 0  ;;  %s842_s0 = inlined_call_operand.hbm [shape: f32[2,8,32], index: 0, kind: input, shape index: {}]   ;;  %s843_s1 = inlined_call_operand.vmem [shape: f32[1,32], index: 1, kind: input, shape index: {}]   ;;  %s844_s2 = inlined_call_operand.hbm [shape: f32[8,32], index: 2, kind: input, shape index: {}]   ;;  %s845_s3 = inlined_call_operand.vmem [shape: f32[1,32], index: 3, kind: input, shape index: {}]   ;;  %s846_s4 = inlined_call_operand.vmem [shape: f32[1,32], index: 4, kind: input, shape index: {}]   ;;  %s847_s5 = inlined_call_operand.hbm [shape: bf16[2,8,32], index: 5, kind: output, shape index: {}]  }
   0x1   :  { %12 = vsyncpa [#allocation3 + $0x1], 0 }
   0x2   :  { %13 = vsyncpa [#allocation6], 0 }
   0x3   :  { %14 = vsyncpa [#allocation4], 0 }
   0x4   :  { %16 = vsyncpa [#allocation4 + $0x1], 0  ;;  %s631_s18 = smov 0   ;;  %s633_s19 = smov 0  }
   0x5   :  { %s635_s20 = smov 0   ;;  %s637_s21 = smov 0  }
   0x6 LB: > { %s652_s22 = sadd.s32 4294967295, %s596_s21   ;;  %s392_s23 = sadd.s32 4294967294, %s596_s21   ;;  %s596_s21 = sphi %s637_s21, %s871_s21   ;;  %s592_s20 = sphi %s635_s20, %s870_s20   ;;  %s588_s19 = sphi %s633_s19, %s869_s19   ;;  %s584_s18 = sphi %s631_s18, %s868_s18  }
   0x7   : > { %p42_p0 = scmp.ne.s32.totalorder %s588_s19, %s584_s18  ;;  %p848_p1 = scmp.eq.s32.totalorder %s652_s22, 0 }
   0x8   : > { %p156_p3 = scmp.eq.s32.totalorder %s392_s23, 1  ;;  %p393_p5 = scmp.ge.s32.totalorder %s596_s21, 1 }
   0x9   : > { %p661_p4 = por %p848_p1, %p42_p0  ;;  %p163_p7 = scmp.lt.s32.totalorder %s596_s21, 3 }
   0xa   : > { %p666_p6 = por %p156_p3, %p42_p0  ;;  %s598_s27 = smov [#allocation5]  }
   0xb   : > { %s851_s24 = scalar_select %p661_p4, 1, 0 }
   0xc   : > { %s852_s25 = scalar_select %p666_p6, 1, 0 }
   0xd   : > { %p671_p8 = pnand %p393_p5, %p163_p7  ;;  %s179_s28 = sshll.u32 %s598_s27, 4  ;;  %s180_s28 = int_to_ptr.vmem [resolvable:$true] %s179_s28 }
   0xe   : > { %s679_s29 = sadd.s32 1, %s596_s21   ;;  %s29_s8 = sadd.s32 1, %s592_s20 }
   0xf   : > { %s853_s26 = scalar_select %p671_p8, 1, 0 }
  0x10   : > { %p417_p10 = pneg %p671_p8  ;;  %s26_s6 = ssub.s32 %s596_s21, %s679_s29 }
  0x11   : > { %p689_p12 = scmp.eq.s32.totalorder %s26_s6, 0  ;;  %s468_s11 = scalar_lea.hbm %s844_s2, 128 }
  0x12   : > { %p683_p11 = pnand %p417_p10, %p848_p1  ;;  %p469_p0 = scmp.ne.s32.totalorder %s844_s2, %s468_s11 }
  0x13   : > { %s855_s7 = scalar_select %p689_p12, 1, 0 }
  0x14   : > { %p470_p3 = pneg %p683_p11  ;;  %p475_p10 = scmp.lt.u32.totalorder %s468_s11, %s844_s2 }
  0x16   : > { %p471_p5 = pnand %p470_p3, %p469_p0 }
  0x18   : > { %p472_p7 = pneg %p471_p5 }
  0x1a   : > { %p477_p9 = pnand %p475_p10, %p472_p7 }
  0x1c   : > { %480 = shalt.err (!%p477_p9)
}
  0x1d   : > { %s481_s16 = scalar_lea.vmem %s180_s28, 128  ;;  %p489_p6 = scmp.lt.s32.totalorder %s180_s28, %s180_s28 }
  0x1e   : > { %p482_p1 = scmp.ne.s32.totalorder %s180_s28, %s481_s16  ;;  %p490_p4 = scmp.lt.s32.totalorder %s481_s16, %s481_s16 }
  0x20   : > { %p484_p2 = pnand %p482_p1, %p470_p3  ;;  %p491_p8 = por %p490_p4, %p489_p6 }
  0x22   : > { %p485_p13 = pneg %p484_p2 }
  0x24   : > { %p492_p12 = pnand %p491_p8, %p485_p13 }
  0x26   : > { %495 = shalt.err (!%p492_p12)
}
  0x27   : > { %420 = dma.hbm_to_vmem [thread:$0]  (!%p683_p11), %s844_s2, 128, %s180_s28, [#allocation6]  }
  0x28   : > { %p856_p1 = scmp.ne.s32.totalorder %s855_s7, 0  ;;  %p37_p2 = scmp.eq.s32.totalorder %s596_s21, 0 }
  0x29   : > { %p857_p4 = scmp.ne.s32.totalorder %s592_s20, %s588_s19  ;;  %p858_p6 = scmp.eq.s32.totalorder %s652_s22, 1 }
  0x2a   : > { %s715_s27 = scalar_select %p856_p1, %s592_s20, %s29_s8  }
  0x2b   : > { %p723_p8 = por %p858_p6, %p857_p4  ;;  %p430_p9 = scmp.lt.s32.totalorder %s596_s21, 2 }
  0x2c   : > { %s196_s6 = sand.u32 1, %s592_s20   ;;  %p860_p12 = pmov %p857_p4 }
  0x2d   : > { %s396_s9 = sshll.u32 %s196_s6, 3  ;;  %s397_s10 = sshll.u32 %s596_s21, 7 }
  0x2e   : > { %p38_p13 = por %p37_p2, %p860_p12  ;;  %s736_s28 = scalar_lea.hbm %s842_s0, %s397_s10 }
  0x2f   : > { %s200_s7 = scalar_lea.vmem [#allocation2], %s396_s9  ;;  %s197_s14 = scalar_lea.sflag [#allocation3], %s196_s6 }
  0x30   : > { %s207_s8 = sshll.u32 %s200_s7, 4  ;;  %p738_p11 = pnand %p430_p9, %p38_p13  ;;  %s742_s8 = int_to_ptr.vmem [resolvable:$true] %s207_s8 }
  0x31   : > { %s496_s15 = scalar_lea.hbm %s736_s28, 128  ;;  %s501_s23 = scalar_lea.hbm %s842_s0, 256 }
  0x32   : > { %p497_p0 = scmp.ne.s32.totalorder %s736_s28, %s496_s15  ;;  %p498_p3 = pneg %p738_p11 }
  0x33   : > { %p502_p10 = scmp.lt.u32.totalorder %s736_s28, %s842_s0  ;;  %p503_p1 = scmp.lt.u32.totalorder %s501_s23, %s496_s15 }
  0x34   : > { %p499_p5 = pnand %p498_p3, %p497_p0  ;;  %p505_p4 = scmp.lt.u32.totalorder %s496_s15, %s736_s28 }
  0x35   : > { %p504_p2 = por %p503_p1, %p502_p10 }
  0x36   : > { %p500_p7 = pneg %p499_p5 }
  0x37   : > { %p506_p6 = por %p505_p4, %p504_p2 }
  0x39   : > { %p507_p9 = pnand %p506_p6, %p500_p7 }
  0x3b   : > { %510 = shalt.err (!%p507_p9)
}
  0x3c   : > { %s511_s6 = scalar_lea.vmem %s742_s8, 128  ;;  %s599_s11 = smov [#allocation2]  }
  0x3d   : > { %p512_p12 = scmp.ne.s32.totalorder %s742_s8, %s511_s6  ;;  %s516_s12 = sshll.u32 %s599_s11, 4  ;;  %s517_s12 = int_to_ptr.vmem [resolvable:$false] %s516_s12 }
  0x3e   : > { %s518_s7 = scalar_lea.vmem %s517_s12, 256  ;;  %p519_p5 = scmp.lt.s32.totalorder %s742_s8, %s517_s12 }
  0x3f   : > { %p514_p13 = pnand %p512_p12, %p498_p3  ;;  %p520_p10 = scmp.lt.s32.totalorder %s518_s7, %s511_s6 }
  0x41   : > { %p515_p0 = pneg %p514_p13  ;;  %p521_p1 = por %p520_p10, %p519_p5 }
  0x43   : > { %p522_p2 = pnand %p521_p1, %p515_p0 }
  0x45   : > { %525 = shalt.err (!%p522_p2)
}
  0x46   : > { %424 = dma.hbm_to_vmem [thread:$0]  (!%p738_p11), %s736_s28, 128, %s742_s8, %s197_s14  }
  0x47   : > { %p862_p7 = scmp.ne.s32.totalorder %s853_s26, 0 }
  0x48   : > { %s772_s15 = sand.u32 (!%p862_p7), 1, %s588_s19   ;;  %p863_p3 = scmp.ne.s32.totalorder (!%p862_p7), %s851_s24, 0 }
  0x49   : > { %216 = sbr.rel (%p862_p7) target bundleno = 419 (0x1a3), region = 40  ;;  %s399_s16 = sshll.u32 (!%p862_p7), %s772_s15, 3 }
  0x4a   : > { %s219_s17 = scalar_lea.sflag (!%p862_p7), [#allocation3], %s772_s15  ;;  %s222_s23 = scalar_lea.vmem (!%p862_p7), [#allocation2], %s399_s16 }
  0x50   : > { %571 = dma.done.wait (%p863_p3), %s219_s17, 128  }
  0x51   : > { %573 = vsyncadd (%p863_p3), %s219_s17, 4294967168  ;;  %p864_p4 = scmp.eq.s32.totalorder %s652_s22, 0 }
  0x53   : > { %575 = dma.done.wait (%p864_p4), [#allocation6], 128   ;;  %p865_p11 = pmov %p864_p4 }
  0x54   : > { %v253_v0 = vld [vmem:[%s222_s23] sm:$0xff]  ;;  %v262_v2 = vld [vmem:[#allocation5] sm:$0xff]  ;;  %vm266_vm0 = vcmask 261120   ;;  %s401_s24 = sshll.u32 %s772_s15, 2  ;;  %s406_s10 = sshll.u32 %s652_s22, 6  ;;  %vm296_vm1 = vcmask 257024  }
  0x55   : > { %577 = vsyncadd (%p865_p11), [#allocation6], 4294967168  ;;  %v402_v1 = vld [vmem:[%s843_s1] ss:$0 sm:$0xff]  ;;  %s252_s6 = scalar_lea.vmem [#allocation7], %s401_s24  ;;  %s798_s16 = scalar_lea.hbm %s847_s5, %s406_s10 }
  0x56   : > { %v261_v3 = vadd.f32 %v402_v1, %v253_v0  ;;  %v403_v15 = vld [vmem:[%s845_s3] ss:$0 sm:$0xff]  ;;  %s312_s11 = sshll.u32 %s252_s6, 4  ;;  %s299_s17 = scalar_lea.sflag [#allocation4], %s772_s15  ;;  %s800_s11 = int_to_ptr.vmem [resolvable:$true] %s312_s11 }
  0x57   : > { %v404_v17 = vld [vmem:[%s846_s4] ss:$0 sm:$0xff]  ;;  %s526_s23 = scalar_lea.vmem %s800_s11, 64  ;;  %s600_s22 = smov [#allocation7]  }
  0x58   : > { %v263_v4 = vadd.f32 %v262_v2, %v261_v3  ;;  %p527_p6 = scmp.ne.s32.totalorder %s800_s11, %s526_s23  ;;  %s530_s26 = sshll.u32 %s600_s22, 4  ;;  %s531_s26 = int_to_ptr.vmem [resolvable:$false] %s530_s26 }
  0x59   : > { %s532_s28 = scalar_lea.vmem %s531_s26, 128  ;;  %p533_p13 = scmp.lt.s32.totalorder %s800_s11, %s531_s26 }
  0x5a   : > { %v267_v5 = vsel %vm266_vm0, %v263_v4, 0.0  ;;  %p528_p9 = pnand %p527_p6, %p723_p8  ;;  %p534_p0 = scmp.lt.s32.totalorder %s532_s28, %s526_s23 }
  0x5b   : > { %268 = vadd.xlane.f32.xlu0 %v267_v5 }
  0x5c   : > { %p529_p12 = pneg %p528_p9  ;;  %p535_p5 = por %p534_p0, %p533_p13 }
  0x5e   : > { %p536_p10 = pnand %p535_p5, %p529_p12 }
  0xe8   : > { %v269_v6 = vpop.xlane.xlu0 %268 }
  0xe9   : > { %v271_v7 = vmul.f32 0.03125, %v269_v6 }
  0xeb   : > { %v272_v8 = vsub.f32 %v263_v4, %v271_v7 }
  0xed   : > { %v273_v9 = vmul.f32 %v272_v8, %v272_v8 }
  0xef   : > { %v274_v10 = vsel %vm266_vm0, %v273_v9, 0.0 }
  0xf0   : > { %275 = vadd.xlane.f32.xlu0 %v274_v10 }
 0x17d   : > { %v276_v11 = vpop.xlane.xlu0 %275 }
 0x17e   : > { %v277_v12 = vmul.f32 0.03125, %v276_v11 }
 0x180   : > { %v278_v13 = vadd.f32 1e-05, %v277_v12 }
 0x182   : > { %466 = vrsqrt.f32 %v278_v13 }
 0x18c   : > { %v467_v14 = vpop.eup %466 }
 0x18d   : > { %v280_v16 = vmul.f32 %v467_v14, %v272_v8 }
 0x18f   : > { %v287_v18 = vmul.f32 %v403_v15, %v280_v16 }
 0x191   : > { %v294_v19 = vadd.f32 %v404_v17, %v287_v18 }
 0x193   : > { %v295_v20 = vpack.c.bf16 %v294_v19, %v294_v19 }
 0x195   : > { %297 = vst.msk [vmem:[%s252_s6] sm:$0xf] %vm296_vm1, %v295_v20 }
 0x196   : > { %539 = shalt.err (!%p536_p10)
}
 0x197   : > { %s540_s15 = scalar_lea.hbm %s798_s16, 64  ;;  %s544_s13 = scalar_lea.hbm %s847_s5, 128 }
 0x198   : > { %p541_p1 = scmp.ne.s32.totalorder %s798_s16, %s540_s15  ;;  %p545_p3 = scmp.lt.u32.totalorder %s798_s16, %s847_s5 }
 0x199   : > { %p546_p4 = scmp.lt.u32.totalorder %s544_s13, %s540_s15  ;;  %p548_p6 = scmp.lt.u32.totalorder %s540_s15, %s798_s16 }
 0x19a   : > { %p542_p2 = pnand %p541_p1, %p723_p8 }
 0x19b   : > { %p547_p11 = por %p546_p4, %p545_p3 }
 0x19c   : > { %p543_p7 = pneg %p542_p2 }
 0x19d   : > { %p549_p9 = por %p548_p6, %p547_p11 }
 0x19f   : > { %p550_p12 = pnand %p549_p9, %p543_p7 }
 0x1a1   : > { %553 = shalt.err (!%p550_p12)
}
 0x1a2   : > { %415 = dma.vmem_to_hbm [thread:$0]  (%p723_p8), %s800_s11, 64, %s798_s16, %s299_s17  }
 0x1a3 PF: > { %s324_s10 = sand.u32 1, %s584_s18   ;;  %p866_p13 = scmp.ne.s32.totalorder %s852_s25, 0 }
 0x1a4   : > { %p867_p0 = scmp.ge.s32.totalorder %s596_s21, 2  ;;  %s325_s6 = scalar_lea.sflag [#allocation4], %s324_s10 }
 0x1a6   : > { %p426_p5 = pnand %p867_p0, %p866_p13 }
 0x1a8   : > { %579 = dma.done.wait (!%p426_p5), %s325_s6, 64  }
 0x1a9   : > { %581 = vsyncadd (!%p426_p5), %s325_s6, 4294967232  ;;  %p19_p10 = scmp.ge.s32.totalorder %s679_s29, 4   ;;  %s868_s18 = smov %s588_s19 }
 0x1aa   : > { %s869_s19 = smov %s592_s20  ;;  %s870_s20 = smov %s715_s27 }
 0x1ab   : > { %s871_s21 = smov %s679_s29  ;;  %21 = sbr.rel (!%p19_p10) target bundleno = 6 (0x6), region = 89 }
 0x1b2   :  { %330 = vsyncpa [#allocation3], 1 }
 0x1b3   :  { %332 = vsyncpa [#allocation3 + $0x1], 1 }
 0x1b4   :  { %333 = vsyncpa [#allocation6], 1 }
 0x1b5   :  { %334 = vsyncpa [#allocation4], 1 }
 0x1b6   :  { %336 = vsyncpa [#allocation4 + $0x1], 1 }

</bundles_post_ra>
